<compile_context>
chip_gen: v7x
topology: tpu7x:2x2x1
jax: 0.10.0
libtpu: 0.0.40
codegen_flags: <defaults>
</compile_context>

<pallas_src>
import functools
import math

import jax
import jax.numpy as jnp
from jax.experimental import pallas as pl
from jax.experimental.pallas import tpu as pltpu


def make_divisible(v, divisor=8, min_value=None):
    if min_value is None:
        min_value = divisor
    new_v = max(min_value, int(v + divisor / 2) // divisor * divisor)
    if new_v < 0.9 * v:
        new_v += divisor
    return new_v


# ---------------------------------------------------------------------------
# hardware-aware sizing helpers
# ---------------------------------------------------------------------------
@functools.lru_cache(maxsize=None)
def _tpu_vmem_capacity():
    """Physical VMEM bytes (64 MiB conservative fallback, i.e. v7x-sized)."""
    try:
        cap = int(getattr(pltpu.get_tpu_info(), "vmem_capacity_bytes"))
        if cap > 0:
            return cap
    except Exception:
        pass
    return 64 << 20


def _vmem_ceiling(cap):
    # Never request the full physical VMEM (leave headroom for Mosaic scratch,
    # semaphores and double-buffer rounding) -> 0.8x physical, >= 16 MiB.
    return max(16 << 20, int(cap * 4 // 5))


def _vmem_limit(cap, *block_bytes):
    need = 2 * sum(int(b) for b in block_bytes) + (4 << 20)
    return int(min(max(need, 16 << 20), _vmem_ceiling(cap)))


def _pick_tiles(rows, hw, itemsize, target_bytes):
    """Pick (r_tile, hw_tile): ~target_bytes per input block, (8,128)-legal."""
    row_unit = max(8, 8 * (4 // itemsize))          # f32: 8, bf16: 16, int8: 32
    target_elems = max(1024, target_bytes // itemsize)
    if hw * min(rows, row_unit) <= target_elems:
        hw_tile = hw                                # full extent -> always legal
    else:
        hw_tile = max(
            128, (min(hw, target_elems // min(rows, row_unit)) // 128) * 128)
        if hw_tile >= hw:
            hw_tile = hw
    rows_fit = max(1, target_elems // hw_tile)
    if rows <= max(rows_fit, row_unit):
        r_tile = rows                               # full extent -> always legal
    else:
        r_tile = max(row_unit, (rows_fit // row_unit) * row_unit)
    # Keep >= 2 row tiles when the row axis is the only parallel axis (megacore).
    if hw_tile == hw and r_tile >= rows and rows >= 2 * row_unit:
        r_tile = max(row_unit, ((rows // 2) // row_unit) * row_unit)
    return r_tile, hw_tile


# ---------------------------------------------------------------------------
# squeeze/excite math (shared by fused kernel and SE kernel)
# ---------------------------------------------------------------------------
def _se_math(pooled, w1t, b1, w2t, b2):
    # pooled: (B, C) f32; w1t: (C, Hid); w2t: (Hid, C); biases: (1, Hid)/(1, C)
    h = jnp.dot(pooled, w1t, preferred_element_type=jnp.float32) + b1
    h = jnp.maximum(h, 0.0)
    s = jnp.dot(h, w2t, preferred_element_type=jnp.float32) + b2
    return jax.nn.sigmoid(s)


# ---------------------------------------------------------------------------
# FUSED single-pass kernel: x resident in VMEM, pool + SE + scale in one call.
# ---------------------------------------------------------------------------
def _fused_kernel(x_ref, w1_ref, b1_ref, w2_ref, b2_ref, o_ref, *, inv_hw):
    x = x_ref[...]                                              # (B, C, HW)
    pooled = jnp.sum(x.astype(jnp.float32), axis=-1) * inv_hw   # (B, C) f32
    scale = _se_math(pooled, w1_ref[...], b1_ref[...], w2_ref[...], b2_ref[...])
    # Multiply in x's native dtype (bf16-native on v6e/v7x, f32 stays f32).
    o_ref[...] = (x * scale[:, :, None].astype(x.dtype)).astype(o_ref.dtype)


def _fused(x3, w1t, b1r, w2t, b2r, inv_hw, cap):
    B, C, HW = x3.shape
    itemsize = x3.dtype.itemsize
    vmem = pltpu.MemorySpace.VMEM
    return pl.pallas_call(
        functools.partial(_fused_kernel, inv_hw=inv_hw),
        out_shape=jax.ShapeDtypeStruct((B, C, HW), x3.dtype),
        in_specs=[pl.BlockSpec(memory_space=vmem) for _ in range(5)],
        out_specs=pl.BlockSpec(memory_space=vmem),
        compiler_params=pltpu.CompilerParams(
            vmem_limit_bytes=_vmem_ceiling(cap)),
        cost_estimate=pl.CostEstimate(
            flops=3 * B * C * HW,
            transcendentals=B * C,
            bytes_accessed=2 * B * C * HW * itemsize),
    )(x3, w1t, b1r, w2t, b2r)


# ---------------------------------------------------------------------------
# Streaming pass 1a: accumulating per-row spatial sum (row = one (b,c) pair).
# Mask only the LAST (ragged) spatial tile; all other tiles are unmasked.
# ---------------------------------------------------------------------------
def _pool_sum_kernel(x_ref, sum_ref, *, hw_total):
    hw_idx = pl.program_id(1)

    @pl.when(hw_idx == 0)
    def _():
        sum_ref[...] = jnp.zeros_like(sum_ref)

    x = x_ref[...].astype(jnp.float32)                  # (r_tile, hw_tile)
    hw_tile = x.shape[-1]
    if hw_total % hw_tile == 0:
        sum_ref[...] += jnp.sum(x, axis=-1, keepdims=True)
    else:
        last = pl.num_programs(1) - 1

        @pl.when(hw_idx != last)
        def _():
            sum_ref[...] += jnp.sum(x, axis=-1, keepdims=True)

        @pl.when(hw_idx == last)
        def _():
            lane = jax.lax.broadcasted_iota(jnp.int32, x.shape, 1) + hw_idx * hw_tile
            xm = jnp.where(lane < hw_total, x, 0.0)
            sum_ref[...] += jnp.sum(xm, axis=-1, keepdims=True)


def _pooled_sums(x2, r_tile, hw_tile, cap):
    # NOTE: rows in a ragged last row tile compute on padded garbage but are
    # clipped on writeback (output only has R rows) -> never read downstream.
    R, HW = x2.shape
    itemsize = x2.dtype.itemsize
    x_block = r_tile * hw_tile * itemsize
    grid = (pl.cdiv(R, r_tile), pl.cdiv(HW, hw_tile))
    return pl.pallas_call(
        functools.partial(_pool_sum_kernel, hw_total=HW),
        out_shape=jax.ShapeDtypeStruct((R, 1), jnp.float32),
        grid=grid,
        in_specs=[pl.BlockSpec((r_tile, hw_tile), lambda r, h: (r, h))],
        out_specs=pl.BlockSpec((r_tile, 1), lambda r, h: (r, 0)),
        compiler_params=pltpu.CompilerParams(
            dimension_semantics=("parallel", "arbitrary"),
            vmem_limit_bytes=_vmem_limit(cap, x_block, r_tile * 4)),
        cost_estimate=pl.CostEstimate(
            flops=R * HW, transcendentals=0,
            bytes_accessed=R * HW * itemsize + R * 4),
    )(x2)


# ---------------------------------------------------------------------------
# Streaming pass 1b: partial sums per hw-tile (used when there is only a single
# row tile, so the hw axis must also be "parallel" to feed both TensorCores).
# ---------------------------------------------------------------------------
def _pool_partial_kernel(x_ref, out_ref, *, hw_total):
    x = x_ref[...].astype(jnp.float32)                  # (r_tile, hw_tile)
    hw_tile = x.shape[-1]
    if hw_total % hw_tile == 0:
        out_ref[...] = jnp.sum(x, axis=-1, keepdims=True)[None]
    else:
        hw_idx = pl.program_id(1)
        last = pl.num_programs(1) - 1

        @pl.when(hw_idx != last)
        def _():
            out_ref[...] = jnp.sum(x, axis=-1, keepdims=True)[None]

        @pl.when(hw_idx == last)
        def _():
            lane = jax.lax.broadcasted_iota(jnp.int32, x.shape, 1) + hw_idx * hw_tile
            xm = jnp.where(lane < hw_total, x, 0.0)
            out_ref[...] = jnp.sum(xm, axis=-1, keepdims=True)[None]


def _pooled_partial(x2, r_tile, hw_tile, cap):
    R, HW = x2.shape
    itemsize = x2.dtype.itemsize
    n_r = pl.cdiv(R, r_tile)     # == 1 on this path (r_tile == R)
    n_hw = pl.cdiv(HW, hw_tile)
    x_block = r_tile * hw_tile * itemsize
    return pl.pallas_call(
        functools.partial(_pool_partial_kernel, hw_total=HW),
        out_shape=jax.ShapeDtypeStruct((n_hw, R, 1), jnp.float32),
        grid=(n_r, n_hw),
        in_specs=[pl.BlockSpec((r_tile, hw_tile), lambda r, h: (r, h))],
        out_specs=pl.BlockSpec((1, r_tile, 1), lambda r, h: (h, r, 0)),
        compiler_params=pltpu.CompilerParams(
            dimension_semantics=("parallel", "parallel"),
            vmem_limit_bytes=_vmem_limit(cap, x_block, r_tile * 4)),
        cost_estimate=pl.CostEstimate(
            flops=R * HW, transcendentals=0,
            bytes_accessed=R * HW * itemsize + n_hw * R * 4),
    )(x2)


# ---------------------------------------------------------------------------
# Streaming SE kernel: 1/HW norm + two tiny matmuls + ReLU + sigmoid in one
# pallas_call (replaces several sub-microsecond XLA glue ops).
# ---------------------------------------------------------------------------
def _se_kernel(p_ref, w1_ref, b1_ref, w2_ref, b2_ref, s_ref, *, inv_hw):
    pooled = p_ref[...] * inv_hw
    s_ref[...] = _se_math(pooled, w1_ref[...], b1_ref[...], w2_ref[...], b2_ref[...])


def _se_pallas(pooled_sums_bc, w1t, b1r, w2t, b2r, inv_hw):
    B, C = pooled_sums_bc.shape
    vmem = pltpu.MemorySpace.VMEM
    return pl.pallas_call(
        functools.partial(_se_kernel, inv_hw=inv_hw),
        out_shape=jax.ShapeDtypeStruct((B, C), jnp.float32),
        in_specs=[pl.BlockSpec(memory_space=vmem) for _ in range(5)],
        out_specs=pl.BlockSpec(memory_space=vmem),
    )(pooled_sums_bc, w1t, b1r, w2t, b2r)


# ---------------------------------------------------------------------------
# Streaming pass 2: out = x * scale (per-row scale, broadcast over lanes).
# ---------------------------------------------------------------------------
def _scale_kernel(x_ref, s_ref, o_ref):
    x = x_ref[...]                                      # native dtype
    s = s_ref[...].astype(x.dtype)                      # (r_tile, 1), cheap cast
    o_ref[...] = (x * s).astype(o_ref.dtype)


def _apply_scale(x2, scale, r_tile, hw_tile, cap):
    R, HW = x2.shape
    itemsize = x2.dtype.itemsize
    x_block = r_tile * hw_tile * itemsize
    grid = (pl.cdiv(R, r_tile), pl.cdiv(HW, hw_tile))
    return pl.pallas_call(
        _scale_kernel,
        out_shape=jax.ShapeDtypeStruct((R, HW), x2.dtype),
        grid=grid,
        in_specs=[
            pl.BlockSpec((r_tile, hw_tile), lambda r, h: (r, h)),
            pl.BlockSpec((r_tile, 1), lambda r, h: (r, 0)),
        ],
        out_specs=pl.BlockSpec((r_tile, hw_tile), lambda r, h: (r, h)),
        compiler_params=pltpu.CompilerParams(
            dimension_semantics=("parallel", "parallel"),
            vmem_limit_bytes=_vmem_limit(cap, x_block, x_block, r_tile * 4)),
        cost_estimate=pl.CostEstimate(
            flops=R * HW, transcendentals=0,
            bytes_accessed=2 * R * HW * itemsize + R * 4),
    )(x2, scale)


# ---------------------------------------------------------------------------
# wrapper
# ---------------------------------------------------------------------------
@functools.partial(jax.jit, static_argnames=("target_block_bytes", "allow_fused"))
def moc_attention(x_nchw, w1, b1, w2, b2, *, target_block_bytes=None,
                  allow_fused=True):
    """Eval-mode MoCAttention forward. x_nchw: (B, C, H, W), any float dtype."""
    B, C, H, W = x_nchw.shape
    HW = H * W
    R = B * C
    itemsize = x_nchw.dtype.itemsize
    inv_hw = 1.0 / HW

    cap = _tpu_vmem_capacity()
    if target_block_bytes is None:
        # Generation-aware block size: ~VMEM/8 (v7x: 8 MiB, v5e/v6e: 16 MiB).
        target_block_bytes = max(2 << 20, cap // 8)

    # SE weights, pre-transposed / f32 (tiny, done once per trace).
    w1t = w1.astype(jnp.float32).T                      # (C, Hid)
    b1r = b1.astype(jnp.float32).reshape(1, -1)         # (1, Hid)
    w2t = w2.astype(jnp.float32).T                      # (Hid, C)
    b2r = b2.astype(jnp.float32).reshape(1, -1)         # (1, C)

    # ---- fused single-pass path when x (+ intermediates) fits in VMEM -------
    x_native = R * HW * itemsize
    x_f32 = R * HW * 4
    weight_bytes = 4 * (w1t.size + w2t.size + b1r.size + b2r.size)
    fused_need = 2 * x_native + 3 * x_f32 + weight_bytes + (2 << 20)
    if allow_fused and fused_need <= int(cap * 3 // 4):
        x3 = x_nchw.reshape(B, C, HW)
        out = _fused(x3, w1t, b1r, w2t, b2r, inv_hw, cap)
        return out.reshape(B, C, H, W)

    # ---- streaming fallback (x too large to keep resident) ------------------
    x2 = x_nchw.reshape(R, HW)
    r_tile, hw_tile = _pick_tiles(R, HW, itemsize, target_block_bytes)
    n_hw = pl.cdiv(HW, hw_tile)

    if r_tile >= R and n_hw >= 2:
        # single row tile: shard the hw axis across cores with partial sums
        partial = _pooled_partial(x2, r_tile, hw_tile, cap)    # (n_hw, R, 1)
        sums = jnp.sum(partial, axis=0)                        # (R, 1) f32
    else:
        sums = _pooled_sums(x2, r_tile, hw_tile, cap)          # (R, 1) f32

    scale_bc = _se_pallas(sums.reshape(B, C), w1t, b1r, w2t, b2r, inv_hw)
    scale = scale_bc.reshape(R, 1)                             # f32

    out = _apply_scale(x2, scale, r_tile, hw_tile, cap)        # (R, HW)
    return out.reshape(B, C, H, W)


# ---------------------------------------------------------------------------
# pure-JAX reference
# ---------------------------------------------------------------------------
def reference(x, w1, b1, w2, b2):
    xf = x.astype(jnp.float32)
    pooled = jnp.mean(xf, axis=(2, 3))                         # (B, C)
    h = jnp.maximum(pooled @ w1.astype(jnp.float32).T + b1.astype(jnp.float32), 0.0)
    s = jax.nn.sigmoid(h @ w2.astype(jnp.float32).T + b2.astype(jnp.float32))
    return (xf * s[:, :, None, None]).astype(x.dtype)


def _check(out, ref, atol, rtol, name):
    ok = jnp.allclose(out.astype(jnp.float32), ref.astype(jnp.float32),
                      atol=atol, rtol=rtol)
    assert ok, f"mismatch ({name})"


if __name__ == "__main__":
    key = jax.random.PRNGKey(0)
    keys = jax.random.split(key, 12)
    (kx, kw1, kb1, kw2, kb2, kx2, kw1b, kb1b, kw2b, kb2b, kx3, kx4) = keys

    SqueezeFactor = 4

    # --- main case: B=2, C=4, H=W=16 (module defaults) -> fused path ----------
    B, C, H, W = 2, 4, 16, 16
    Hid = max(make_divisible(C // SqueezeFactor, 8), 32)          # -> 32
    x = jax.random.normal(kx, (B, C, H, W), dtype=jnp.float32)
    bound1 = 1.0 / math.sqrt(C)
    w1 = jax.random.uniform(kw1, (Hid, C), jnp.float32, -bound1, bound1)
    b1 = jax.random.uniform(kb1, (Hid,), jnp.float32, -bound1, bound1)
    bound2 = 1.0 / math.sqrt(Hid)
    w2 = jax.random.uniform(kw2, (C, Hid), jnp.float32, -bound2, bound2)
    b2 = jax.random.uniform(kb2, (C,), jnp.float32, -bound2, bound2)

    ref = reference(x, w1, b1, w2, b2)
    out = jax.block_until_ready(moc_attention(x, w1, b1, w2, b2))
    assert out.shape == (B, C, H, W)
    _check(out, ref, 1e-4, 1e-4, "fused main")

    # --- same case forced through the streaming path --------------------------
    out_s = jax.block_until_ready(moc_attention(x, w1, b1, w2, b2, allow_fused=False))
    _check(out_s, ref, 1e-4, 1e-4, "streaming main")

    # --- ragged rows + ragged HW, tiny forced tiles (accumulating pass 1) -----
    Cb = 5
    Hidb = max(make_divisible(Cb // SqueezeFactor, 8), 32)        # -> 32
    xb = jax.random.normal(kx2, (2, Cb, 16, 17), dtype=jnp.float32)
    bb1 = 1.0 / math.sqrt(Cb)
    w1b = jax.random.uniform(kw1b, (Hidb, Cb), jnp.float32, -bb1, bb1)
    b1b = jax.random.uniform(kb1b, (Hidb,), jnp.float32, -bb1, bb1)
    bb2 = 1.0 / math.sqrt(Hidb)
    w2b = jax.random.uniform(kw2b, (Cb, Hidb), jnp.float32, -bb2, bb2)
    b2b = jax.random.uniform(kb2b, (Cb,), jnp.float32, -bb2, bb2)
    outb = jax.block_until_ready(
        moc_attention(xb, w1b, b1b, w2b, b2b,
                      target_block_bytes=4096, allow_fused=False))
    _check(outb, reference(xb, w1b, b1b, w2b, b2b), 1e-4, 1e-4, "ragged accum")

    # --- single row tile + multiple HW tiles -> partial-sums pass 1 -----------
    xp = jax.random.normal(kx3, (1, 4, 16, 17), dtype=jnp.float32)
    outp = jax.block_until_ready(
        moc_attention(xp, w1, b1, w2, b2,
                      target_block_bytes=4096, allow_fused=False))
    _check(outp, reference(xp, w1, b1, w2, b2), 1e-4, 1e-4, "partial sums")

    # --- bf16: fused and streaming (native bf16 multiply) ---------------------
    xc = jax.random.normal(kx4, (1, 4, 9, 7), dtype=jnp.bfloat16)
    refc = reference(xc, w1, b1, w2, b2)
    outc = jax.block_until_ready(moc_attention(xc, w1, b1, w2, b2))
    assert outc.dtype == jnp.bfloat16
    _check(outc, refc, 2e-2, 2e-2, "bf16 fused")
    outc2 = jax.block_until_ready(
        moc_attention(xc, w1, b1, w2, b2,
                      target_block_bytes=4096, allow_fused=False))
    _check(outc2, refc, 2e-2, 2e-2, "bf16 streaming")

    print("KERNEL_OK")
</pallas_src>

<mosaic_0001>
module attributes {stable_mosaic.version = 11 : i64} {
  func.func @_fused_kernel(%arg0: memref<2x4x256xf32, #tpu.memory_space<vmem>>, %arg1: memref<4x32xf32, #tpu.memory_space<vmem>>, %arg2: memref<1x32xf32, #tpu.memory_space<vmem>>, %arg3: memref<32x4xf32, #tpu.memory_space<vmem>>, %arg4: memref<1x4xf32, #tpu.memory_space<vmem>>, %arg5: memref<2x4x256xf32, #tpu.memory_space<vmem>>) attributes {dimension_semantics = [], scalar_prefetch = 0 : i64, scratch_operands = 0 : i64, tpu.core_type = #tpu.core_type<tc>} {
    %c0 = arith.constant 0 : index
    %c0_0 = arith.constant 0 : index
    %c0_1 = arith.constant 0 : index
    %0 = vector.load %arg0[%c0, %c0_0, %c0_1] : memref<2x4x256xf32, #tpu.memory_space<vmem>>, vector<2x4x256xf32>
    %cst = arith.constant dense<0.000000e+00> : vector<2x4xf32>
    %1 = vector.multi_reduction <add>, %0, %cst [2] : vector<2x4x256xf32> to vector<2x4xf32>
    %cst_2 = arith.constant 3.906250e-03 : f32
    %2 = vector.broadcast %cst_2 : f32 to vector<2x4xf32>
    %3 = arith.mulf %1, %2 : vector<2x4xf32>
    %c0_3 = arith.constant 0 : index
    %c0_4 = arith.constant 0 : index
    %4 = vector.load %arg1[%c0_3, %c0_4] : memref<4x32xf32, #tpu.memory_space<vmem>>, vector<4x32xf32>
    %c0_5 = arith.constant 0 : index
    %c0_6 = arith.constant 0 : index
    %5 = vector.load %arg2[%c0_5, %c0_6] : memref<1x32xf32, #tpu.memory_space<vmem>>, vector<1x32xf32>
    %c0_7 = arith.constant 0 : index
    %c0_8 = arith.constant 0 : index
    %6 = vector.load %arg3[%c0_7, %c0_8] : memref<32x4xf32, #tpu.memory_space<vmem>>, vector<32x4xf32>
    %c0_9 = arith.constant 0 : index
    %c0_10 = arith.constant 0 : index
    %7 = vector.load %arg4[%c0_9, %c0_10] : memref<1x4xf32, #tpu.memory_space<vmem>>, vector<1x4xf32>
    %cst_11 = arith.constant dense<0.000000e+00> : vector<2x32xf32>
    %8 = tpu.matmul %3, %4, %cst_11 {dimension_numbers = #tpu.dot_dimension_numbers<[1], [0], [0], [1], [0, 0, 1, 1], [], []>} : vector<2x4xf32>, vector<4x32xf32>, vector<2x32xf32> -> vector<2x32xf32>
    %9 = vector.broadcast %5 : vector<1x32xf32> to vector<2x32xf32>
    %10 = arith.addf %8, %9 : vector<2x32xf32>
    %cst_12 = arith.constant 0.000000e+00 : f32
    %11 = vector.broadcast %cst_12 : f32 to vector<2x32xf32>
    %12 = arith.maximumf %10, %11 : vector<2x32xf32>
    %cst_13 = arith.constant dense<0.000000e+00> : vector<2x4xf32>
    %13 = tpu.matmul %12, %6, %cst_13 {dimension_numbers = #tpu.dot_dimension_numbers<[1], [0], [0], [1], [0, 0, 1, 1], [], []>} : vector<2x32xf32>, vector<32x4xf32>, vector<2x4xf32> -> vector<2x4xf32>
    %14 = vector.broadcast %7 : vector<1x4xf32> to vector<2x4xf32>
    %15 = arith.addf %13, %14 : vector<2x4xf32>
    %16 = arith.negf %15 : vector<2x4xf32>
    %17 = math.exp %16 : vector<2x4xf32>
    %cst_14 = arith.constant 1.000000e+00 : f32
    %18 = vector.broadcast %cst_14 : f32 to vector<2x4xf32>
    %19 = arith.addf %18, %17 : vector<2x4xf32>
    %20 = arith.divf %18, %19 : vector<2x4xf32>
    %21 = vector.shape_cast %20 : vector<2x4xf32> to vector<2x4x1xf32>
    %22 = vector.broadcast %21 : vector<2x4x1xf32> to vector<2x4x256xf32>
    %23 = arith.mulf %0, %22 : vector<2x4x256xf32>
    %c0_15 = arith.constant 0 : index
    %c0_16 = arith.constant 0 : index
    %c0_17 = arith.constant 0 : index
    %24 = vector.load %arg5[%c0_15, %c0_16, %c0_17] : memref<2x4x256xf32, #tpu.memory_space<vmem>>, vector<2x4x256xf32>
    tpu.vector_store %arg5[%c0_15, %c0_16, %c0_17], %23 {strides = array<i32>} : memref<2x4x256xf32, #tpu.memory_space<vmem>>, vector<2x4x256xf32>,
    return
  }
}

</mosaic_0001>

<bundles_post_ra>
// kernel: moc_attention.1
= control target key start
LH: loop header
LB: loop body
LE: loop exit
PB: predicated region body
PF: predicated region fallthrough
CT: control target
= control target key end

     0   :  { %vm28_vm0 = vcmask 1043456   ;;  %v316_v10 = vmov 0.0   ;;  %vm317_vm1 = vmmov 0   ;;  %v318_v12 = vmov 0.0|0.0   ;;  %s400_s0 = inlined_call_operand.vmem [shape: f32[2,4,256], index: 0, kind: input, shape index: {}]   ;;  %s401_s1 = inlined_call_operand.vmem [shape: f32[4,32], index: 1, kind: input, shape index: {}]   ;;  %s402_s3 = inlined_call_operand.vmem [shape: f32[32,4], index: 3, kind: input, shape index: {}]   ;;  %s403_s2 = inlined_call_operand.vmem [shape: f32[1,32], index: 2, kind: input, shape index: {}]   ;;  %s404_s4 = inlined_call_operand.vmem [shape: f32[1,4], index: 4, kind: input, shape index: {}]   ;;  %s405_s5 = inlined_call_operand.vmem [shape: f32[2,4,256], index: 5, kind: output, shape index: {}]  }
   0x1   :  { %v353_v0 = vld [vmem:[%s400_s0] sm:$0xff]  ;;  %v358_v1 = vld [vmem:[%s400_s0 + $0x8] sm:$0xff]  ;;  %284 = vmatprep.subr.mxu0 %v316_v10  ;;  %286 = vmatprep.mubr.msk.f32.mxu0 %vm317_vm1, %v316_v10  ;;  %v56_v16 = vlaneseq  ;;  %vm66_vm2 = vcmask 1041409   ;;  %vm68_vm3 = vcmask 31744   ;;  %v45_v27 = vld [vmem:[%s402_s3 + $0x10] sm:$0xff]  ;;  %vm151_vm4 = vcmask 261120  }
   0x2   :  { %v24_v2 = vcombine.high %v353_v0, %v353_v0  ;;  %v29_v3 = vsel %vm28_vm0, %v353_v0, 0.0  ;;  %v25_v4 = vcombine.high %v358_v1, %v358_v1  ;;  %v34_v6 = vsel %vm28_vm0, %v358_v1, 0.0  ;;  %v41_v11 = vld [vmem:[%s401_s1] sm:$0xf]  ;;  %297 = vmatprep.mubr.msk.f32.mxu1 %vm317_vm1, %v316_v10  ;;  %300 = vmatprep.subr.bf16.mxu1 %v318_v12  ;;  %v44_v14 = vld [vmem:[%s402_s3 + $0x8] sm:$0xff]  ;;  %v46_v28 = vld [vmem:[%s402_s3 + $0x18] sm:$0xff] }
   0x3   :  { %285 = vmatpush3.msk.msra.mxu0 %vm28_vm0, %v41_v11  ;;  %v43_v13 = vld [vmem:[%s402_s3] sm:$0xff]  ;;  %v57_v17 = vand.u32 127, %v56_v16  ;;  %v59_v18 = vshrl.u32 %v56_v16, 7  ;;  %v304_v29 = vpack.c.bf16 %v46_v28, %v45_v27  ;;  %v319_v47 = vmov 839922192  }
   0x4   :  { %v30_v5 = vsel %vm28_vm0, %v24_v2, 0.0  ;;  %v35_v7 = vsel %vm28_vm0, %v25_v4, 0.0  ;;  %v301_v15 = vpack.c.bf16 %v44_v14, %v43_v13  ;;  %v271_v30 = vld [vmem:[%s403_s2] ss:$0 sm:$0xff]  ;;  %v248_v48 = vunpack.c.l.s4 %v319_v47 }
   0x5   :  { %v31_v8 = vadd.f32 %v30_v5, %v29_v3  ;;  %v36_v9 = vadd.f32 %v35_v7, %v34_v6  ;;  %v60_v20 = vsub.s32 %v57_v17, %v59_v18  ;;  %v274_v35 = vld [vmem:[%s404_s4] ss:$0 sm:$0xff]  ;;  %v233_v42 = vsub.s32 0, %v59_v18 }
   0x6   :  { %302 = vmatpush3.bf16.msra.mxu1 %v301_v15  ;;  %v240_v45 = vsub.s32 1, %v59_v18  ;;  %v249_v49 = vunpack.c.0.s8 %v248_v48 }
   0x7   :  { %32 = vadd.xlane.f32.xlu0 %v31_v8  ;;  %303 = vmatprep.subr.bf16.mxu1 %v318_v12 }
   0x8   :  { %v252_v50 = vsub.s32 %v249_v49, %v59_v18 }
   0xa   :  { %305 = vmatpush3.bf16.msra.mxu1 %v304_v29 }
   0xb   :  { %37 = vadd.xlane.f32.xlu0 %v36_v9 }
  0x94   :  { %v33_v19 = vpop.xlane.xlu0 %32 }
  0x95   :  { %v39_v21 = vmul.f32 0.00390625, %v33_v19 }
  0x97   :  { %v61_v24 = vrot.slane %v39_v21, %v60_v20 }
  0x98   :  { %v38_v22 = vpop.xlane.xlu0 %37 }
  0x99   :  { %v40_v23 = vmul.f32 0.00390625, %v38_v22 }
  0x9b   :  { %v65_v25 = vrot.slane %v40_v23, %v60_v20 }
  0x9d   :  { %v67_v26 = vsel %vm66_vm2, %v65_v25, %v61_v24 }
  0x9e   :  { %287 = vmatmul.mubr.msk.f32.vlgmr.msra.gmra.mrb[0].mxu0 %vm68_vm3, %v67_v26 }
 0x171   :  { %v140_v31 = vpop.f32.mrb[0].mxu0 }
 0x172   :  { %v141_v32 = vadd.f32 %v271_v30, %v140_v31  ;;  %v288_v33 = vpop.f32.mrb[1].mxu0 }
 0x174   :  { %v144_v34 = vmax.f32 %v141_v32, 0.0 }
 0x176   :  { %298 = vmatmul.mubr.msk.f32.vlgmr.msra.gmra.mrb[0].mxu1 %vm151_vm4, %v144_v34 }
 0x249   :  { %v221_v36 = vpop.f32.mrb[0].mxu1 }
 0x24a   :  { %v222_v37 = vadd.f32 %v274_v35, %v221_v36  ;;  %v299_v38 = vpop.f32.mrb[1].mxu1 }
 0x24c   :  { %v276_v39 = vmul.f32 -1.442695, %v222_v37 }
 0x24e   :  { %312 = vpow2.f32 %v276_v39 }
 0x258   :  { %v313_v40 = vpop.eup %312 }
 0x259   :  { %v228_v41 = vadd.f32 1.0, %v313_v40 }
 0x25b   :  { %314 = vrcp.f32 %v228_v41 }
 0x265   :  { %v315_v43 = vpop.eup %314 }
 0x266   :  { %v234_v44 = vrot.slane %v315_v43, %v233_v42  ;;  %v241_v46 = vrot.slane %v315_v43, %v240_v45 }
 0x268   :  { %236 = vbcast.lane.b32.xlu1 %v234_v44, 256 }
 0x26c   :  { %243 = vbcast.lane.b32.xlu1 %v241_v46, 256 }
 0x2da   :  { %v237_v51 = vpop.permute.xlu1 %236 }
 0x2db   :  { %v253_v52 = vrot.slane %v237_v51, %v252_v50 }
 0x2dd   :  { %v263_v53 = vmul.f32 %v253_v52, %v353_v0 }
 0x2de   :  { %v244_v54 = vpop.permute.xlu1 %243 }
 0x2df   :  { %265 = vst [vmem:[%s405_s5] sm:$0xff] %v263_v53  ;;  %v260_v55 = vrot.slane %v244_v54, %v252_v50 }
 0x2e1   :  { %v264_v56 = vmul.f32 %v260_v55, %v358_v1 }
 0x2e3   :  { %266 = vst [vmem:[%s405_s5 + $0x8] sm:$0xff] %v264_v56 }

</bundles_post_ra>
